<compile_context>
chip_gen: v7x
topology: tpu7x:2x2x1
jax: 0.10.0
libtpu: 0.0.40
codegen_flags: <defaults>
</compile_context>

<pallas_src>
import functools

import jax
import jax.numpy as jnp
from jax import lax
from jax.experimental import pallas as pl
from jax.experimental.pallas import tpu as pltpu


def _round_up(x, m):
    return (x + m - 1) // m * m


def _vmem_limit_bytes():
    """Scoped VMEM limit ~= half of physical VMEM (v5e/v6e: 128 MiB, v7x: 64 MiB)."""
    cap = 64 * 1024 * 1024
    try:
        cap = int(getattr(pltpu.get_tpu_info(), "vmem_capacity_bytes", cap))
    except Exception:  # query unavailable -> conservative default
        pass
    return int(min(max(cap // 2, 32 * 1024 * 1024), 96 * 1024 * 1024))


def _choose_tiling(N, Cin, Cout, S_pad, bytes_in, bytes_out, budget):
    """Pick (Nb, tile_s): double-buffered in+out blocks stay under `budget` bytes."""
    per_lane = 2 * (Cin * bytes_in + Cout * bytes_out)  # per sample, per lane col
    max_tile = max(128, (budget // max(per_lane, 1)) // 128 * 128)
    tile_s = min(S_pad, max_tile)
    while S_pad % tile_s != 0:          # S_pad and tile_s are multiples of 128
        tile_s -= 128
    tile_s = max(tile_s, 128)
    nb = 1
    for cand in range(1, N + 1):        # batch samples per block to raise step work
        if N % cand == 0 and cand * per_lane * tile_s <= budget:
            nb = cand
    return nb, tile_s


def _batched_conv1x1(w, x):
    """y[n,o,s] = sum_c w[o,c] * x[n,c,s] without any in-kernel transpose."""
    wb = jnp.broadcast_to(w, (x.shape[0], w.shape[0], w.shape[1]))      # (Nb,Cout,Cin)
    return lax.dot_general(wb, x, (((2,), (1,)), ((0,), (0,))),
                           preferred_element_type=jnp.float32)          # (Nb,Cout,S)


# --------------------------- fast path: single fused kernel ---------------------------
def _fused_kernel(x_ref, w_ref, gamma_ref, beta_ref, o_ref, *, eps, inv_m, s_valid):
    x = x_ref[...].astype(jnp.float32)                      # (N, Cin, S_pad)
    w = w_ref[...].astype(jnp.float32)                      # (Cout, Cin)
    y = _batched_conv1x1(w, x)                              # (N, Cout, S_pad) f32

    # Batch statistics over the TRUE N*S elements: zero pad contributes 0 to the sum,
    # and the centered pass masks the pad columns -> matches PyTorch training mode.
    mean = jnp.sum(y, axis=(0, 2), keepdims=True) * inv_m   # (1, Cout, 1)
    s_pad = y.shape[-1]
    if s_pad == s_valid:
        yc = y - mean
    else:
        valid = lax.broadcasted_iota(jnp.int32, (1, 1, s_pad), 2) < s_valid
        yc = jnp.where(valid, y - mean, 0.0)
    var = jnp.sum(yc * yc, axis=(0, 2), keepdims=True) * inv_m
    inv_std = lax.rsqrt(var + eps)

    scale = gamma_ref[...].astype(jnp.float32)[None] * inv_std   # (1, Cout, 1)
    shift = beta_ref[...].astype(jnp.float32)[None] - mean * scale
    o_ref[...] = (y * scale + shift).astype(o_ref.dtype)


# ----------------------- fallback path: two tiled, pipelined passes -------------------
def _stats_kernel(x_ref, w_ref, gamma_ref, beta_ref, scale_ref, shift_ref,
                  sumx_acc, gram_acc, *, eps, inv_m):
    n = pl.program_id(0)
    s = pl.program_id(1)

    @pl.when(jnp.logical_and(n == 0, s == 0))
    def _init():
        sumx_acc[...] = jnp.zeros_like(sumx_acc)
        gram_acc[...] = jnp.zeros_like(gram_acc)

    x = x_ref[...].astype(jnp.float32)                                  # (Nb,Cin,tile_s)
    sumx_acc[...] += jnp.sum(jnp.sum(x, axis=2, keepdims=True), axis=0)  # (Cin, 1)
    # Gram matrix: MXU contraction over the long lane dim; no y materialization here.
    g = lax.dot_general(x, x, (((2,), (2,)), ((0,), (0,))),
                        preferred_element_type=jnp.float32)             # (Nb,Cin,Cin)
    gram_acc[...] += jnp.sum(g, axis=0)                                  # (Cin, Cin)

    @pl.when(jnp.logical_and(n == pl.num_programs(0) - 1,
                             s == pl.num_programs(1) - 1))
    def _finalize():
        w = w_ref[...].astype(jnp.float32)                               # (Cout, Cin)
        mean = jnp.dot(w, sumx_acc[...],
                       preferred_element_type=jnp.float32) * inv_m       # (Cout, 1)
        t = jnp.dot(w, gram_acc[...], preferred_element_type=jnp.float32)  # (Cout,Cin)
        ey2 = jnp.sum(t * w, axis=1, keepdims=True) * inv_m
        # TODO(synk): E[y^2]-mean^2 can cancel for strongly non-zero-mean activations;
        #             the fused path uses the exact centered formulation instead.
        var = jnp.maximum(ey2 - mean * mean, 0.0)
        inv_std = lax.rsqrt(var + eps)
        scale = gamma_ref[...].astype(jnp.float32) * inv_std
        scale_ref[...] = scale
        shift_ref[...] = beta_ref[...].astype(jnp.float32) - mean * scale


def _apply_kernel(x_ref, w_ref, scale_ref, shift_ref, o_ref):
    x = x_ref[...].astype(jnp.float32)                      # (Nb, Cin, tile_s)
    w = w_ref[...].astype(jnp.float32)                      # (Cout, Cin)
    y = _batched_conv1x1(w, x)                              # (Nb, Cout, tile_s)
    o_ref[...] = (y * scale_ref[...][None] + shift_ref[...][None]).astype(o_ref.dtype)


# --------------------------------------- wrapper ---------------------------------------
def res_branch_forward(x, conv_w, bn_gammas, bn_betas, task_idx, stride,
                       eps=1e-5, out_dtype=None, force_two_pass=False):
    """x: (N, Cin, H, W) NCHW.  conv_w: (Cout, Cin, 1, 1).  Returns (N, Cout, Ho, Wo)."""
    N, Cin, H, W = x.shape
    Cout = conv_w.shape[0]
    out_dtype = x.dtype if out_dtype is None else out_dtype

    # Glue: strided subsample + free reshape to (N, Cin, S).  NCHW preserved.
    xs = x[:, :, ::stride, ::stride]
    _, _, Ho, Wo = xs.shape
    S = Ho * Wo
    x3 = xs.reshape(N, Cin, S)

    # Pad S to a multiple of 128 (lane-dense, unmasked stores).  Zero pad keeps the
    # batch stats exact because inv_m below uses the true M = N*S.
    S_pad = _round_up(S, 128)
    if S_pad != S:
        x3 = jnp.pad(x3, ((0, 0), (0, 0), (0, S_pad - S)))

    w2d = conv_w.reshape(Cout, Cin)
    # task_idx is a static Python int (mirrors ModuleList indexing in PyTorch).
    gamma = bn_gammas[task_idx].reshape(Cout, 1).astype(jnp.float32)
    beta = bn_betas[task_idx].reshape(Cout, 1).astype(jnp.float32)

    M = N * S
    inv_m = 1.0 / M
    vmem_limit = _vmem_limit_bytes()
    bytes_in = jnp.dtype(x.dtype).itemsize
    bytes_out = jnp.dtype(out_dtype).itemsize

    # ---------------- fast path: one fused kernel when the working set fits VMEM ------
    fused_bytes = (2 * N * Cin * S_pad * bytes_in           # x (I/O buffering)
                   + 2 * N * Cout * S_pad * bytes_out       # output
                   + 3 * N * Cout * S_pad * 4)              # y + f32 intermediates
    if not force_two_pass and fused_bytes <= vmem_limit // 2:
        y3 = pl.pallas_call(
            functools.partial(_fused_kernel, eps=eps, inv_m=inv_m, s_valid=S),
            out_shape=jax.ShapeDtypeStruct((N, Cout, S_pad), out_dtype),
            grid=(1,),
            in_specs=[pl.BlockSpec((N, Cin, S_pad), lambda i: (0, 0, 0)),
                      pl.BlockSpec((Cout, Cin), lambda i: (0, 0)),
                      pl.BlockSpec((Cout, 1), lambda i: (0, 0)),
                      pl.BlockSpec((Cout, 1), lambda i: (0, 0))],
            out_specs=pl.BlockSpec((N, Cout, S_pad), lambda i: (0, 0, 0)),
            compiler_params=pltpu.CompilerParams(vmem_limit_bytes=vmem_limit),
        )(x3, w2d, gamma, beta)
        y3 = y3[:, :, :S] if S_pad != S else y3
        return y3.reshape(N, Cout, Ho, Wo)

    # ---------------- fallback: two tiled, pipelined passes ---------------------------
    nb, tile_s = _choose_tiling(N, Cin, Cout, S_pad, bytes_in, bytes_out,
                                budget=vmem_limit // 2)
    num_n = N // nb
    num_s = S_pad // tile_s

    x_spec = pl.BlockSpec((nb, Cin, tile_s), lambda n, s: (n, 0, s))
    w_spec = pl.BlockSpec((Cout, Cin), lambda n, s: (0, 0))
    cvec_spec = pl.BlockSpec((Cout, 1), lambda n, s: (0, 0))

    # Pass 1: sum(x) + Gram(x) accumulators -> folded BN scale/shift.
    scale, shift = pl.pallas_call(
        functools.partial(_stats_kernel, eps=eps, inv_m=inv_m),
        out_shape=(jax.ShapeDtypeStruct((Cout, 1), jnp.float32),
                   jax.ShapeDtypeStruct((Cout, 1), jnp.float32)),
        grid_spec=pltpu.PrefetchScalarGridSpec(
            num_scalar_prefetch=0,
            grid=(num_n, num_s),
            in_specs=[x_spec, w_spec, cvec_spec, cvec_spec],
            out_specs=(cvec_spec, cvec_spec),
            scratch_shapes=[pltpu.VMEM((Cin, 1), jnp.float32),
                            pltpu.VMEM((Cin, Cin), jnp.float32)],
        ),
        compiler_params=pltpu.CompilerParams(
            dimension_semantics=("arbitrary", "arbitrary"),
            vmem_limit_bytes=vmem_limit),
    )(x3, w2d, gamma, beta)

    # Pass 2: batched conv matmul + normalize/affine, lane-dense NCHW output stream.
    y3 = pl.pallas_call(
        _apply_kernel,
        out_shape=jax.ShapeDtypeStruct((N, Cout, S_pad), out_dtype),
        grid_spec=pltpu.PrefetchScalarGridSpec(
            num_scalar_prefetch=0,
            grid=(num_n, num_s),
            in_specs=[x_spec, w_spec, cvec_spec, cvec_spec],
            out_specs=pl.BlockSpec((nb, Cout, tile_s), lambda n, s: (n, 0, s)),
        ),
        compiler_params=pltpu.CompilerParams(
            dimension_semantics=("parallel", "parallel"),
            vmem_limit_bytes=vmem_limit),
    )(x3, w2d, scale, shift)

    y3 = y3[:, :, :S] if S_pad != S else y3
    return y3.reshape(N, Cout, Ho, Wo)


def _reference_forward(x, conv_w, bn_gammas, bn_betas, task_idx, stride, eps=1e-5):
    """Pure-JAX reference mirroring PyTorch training-mode forward."""
    xs = x[:, :, ::stride, ::stride]
    w2d = conv_w.reshape(conv_w.shape[0], conv_w.shape[1])
    y = jnp.einsum("nchw,oc->nohw", xs, w2d)
    mean = jnp.mean(y, axis=(0, 2, 3), keepdims=True)
    var = jnp.mean((y - mean) ** 2, axis=(0, 2, 3), keepdims=True)
    g = bn_gammas[task_idx].reshape(1, -1, 1, 1)
    b = bn_betas[task_idx].reshape(1, -1, 1, 1)
    return (y - mean) / jnp.sqrt(var + eps) * g + b


if __name__ == "__main__":
    # Module config: in_channels=4, out_channels=8, stride=2, expansion=2 -> Cout=16
    in_channels, out_channels, stride, expansion = 4, 8, 2, 2
    Cout = out_channels * expansion
    N, H, W = 2, 16, 16
    task_idx = 1

    key = jax.random.PRNGKey(0)
    kx, kw, kg, kb = jax.random.split(key, 4)

    x = jax.random.normal(kx, (N, in_channels, H, W), dtype=jnp.float32)
    conv_w = jax.random.normal(kw, (Cout, in_channels, 1, 1), dtype=jnp.float32) * 0.1
    bn_gammas = 1.0 + 0.1 * jax.random.normal(kg, (2, Cout), dtype=jnp.float32)
    bn_betas = 0.1 * jax.random.normal(kb, (2, Cout), dtype=jnp.float32)

    ref = _reference_forward(x, conv_w, bn_gammas, bn_betas, task_idx, stride)

    # Fast fused path (the demo working set trivially fits VMEM).
    out = res_branch_forward(x, conv_w, bn_gammas, bn_betas, task_idx, stride)
    out = jax.block_until_ready(out)
    assert out.shape == (N, Cout, H // stride, W // stride), out.shape
    assert jnp.allclose(out, ref, atol=1e-4, rtol=1e-4), float(jnp.max(jnp.abs(out - ref)))

    # Also exercise the tiled two-pass fallback (what large shapes would take).
    out2 = res_branch_forward(x, conv_w, bn_gammas, bn_betas, task_idx, stride,
                              force_two_pass=True)
    out2 = jax.block_until_ready(out2)
    assert jnp.allclose(out2, ref, atol=1e-4, rtol=1e-4), float(jnp.max(jnp.abs(out2 - ref)))

    print("KERNEL_OK")
</pallas_src>

<mosaic_0001>
module attributes {stable_mosaic.version = 11 : i64} {
  func.func @_fused_kernel(%arg0: i32, %arg1: memref<2x4x128xf32, #tpu.memory_space<vmem>>, %arg2: memref<16x4xf32, #tpu.memory_space<vmem>>, %arg3: memref<16x1xf32, #tpu.memory_space<vmem>>, %arg4: memref<16x1xf32, #tpu.memory_space<vmem>>, %arg5: memref<2x16x128xf32, #tpu.memory_space<vmem>>) attributes {dimension_semantics = [#tpu.dimension_semantics<arbitrary>], iteration_bounds = array<i64: 1>, scalar_prefetch = 0 : i64, scratch_operands = 0 : i64, tpu.core_type = #tpu.core_type<tc>, window_params = [{pipeline_mode = #tpu.pipeline_mode<synchronous>, transform_indices = @transform_0, window_bounds = array<i64: 2, 4, 128>}, {pipeline_mode = #tpu.pipeline_mode<synchronous>, transform_indices = @transform_1, window_bounds = array<i64: 16, 4>}, {pipeline_mode = #tpu.pipeline_mode<synchronous>, transform_indices = @transform_2, window_bounds = array<i64: 16, 1>}, {pipeline_mode = #tpu.pipeline_mode<synchronous>, transform_indices = @transform_3, window_bounds = array<i64: 16, 1>}, {pipeline_mode = #tpu.pipeline_mode<synchronous>, transform_indices = @transform_4, window_bounds = array<i64: 2, 16, 128>}]} {
    %c0 = arith.constant 0 : index
    %c0_0 = arith.constant 0 : index
    %c0_1 = arith.constant 0 : index
    %0 = vector.load %arg1[%c0, %c0_0, %c0_1] : memref<2x4x128xf32, #tpu.memory_space<vmem>>, vector<2x4x128xf32>
    %c0_2 = arith.constant 0 : index
    %c0_3 = arith.constant 0 : index
    %1 = vector.load %arg2[%c0_2, %c0_3] : memref<16x4xf32, #tpu.memory_space<vmem>>, vector<16x4xf32>
    %2 = vector.shape_cast %1 : vector<16x4xf32> to vector<1x16x4xf32>
    %3 = vector.broadcast %2 : vector<1x16x4xf32> to vector<2x16x4xf32>
    %cst = arith.constant dense<0.000000e+00> : vector<2x16x128xf32>
    %4 = tpu.matmul %3, %0, %cst {dimension_numbers = #tpu.dot_dimension_numbers<[2], [1], [1], [2], [0, 0, 0, 1, 1, 2], [0], [0]>} : vector<2x16x4xf32>, vector<2x4x128xf32>, vector<2x16x128xf32> -> vector<2x16x128xf32>
    %cst_4 = arith.constant dense<0.000000e+00> : vector<16xf32>
    %5 = vector.multi_reduction <add>, %4, %cst_4 [0, 2] : vector<2x16x128xf32> to vector<16xf32>
    %6 = vector.shape_cast %5 : vector<16xf32> to vector<1x16x1xf32>
    %cst_5 = arith.constant 7.812500e-03 : f32
    %7 = vector.broadcast %cst_5 : f32 to vector<1x16x1xf32>
    %8 = arith.mulf %6, %7 : vector<1x16x1xf32>
    %9 = tpu.iota {dimensions = array<i32: 2>} : vector<1x1x128xi32>
    %c64_i32 = arith.constant 64 : i32
    %10 = vector.broadcast %c64_i32 : i32 to vector<1x1x128xi32>
    %11 = arith.cmpi slt, %9, %10 : vector<1x1x128xi32>
    %12 = vector.broadcast %8 : vector<1x16x1xf32> to vector<2x16x128xf32>
    %13 = arith.subf %4, %12 : vector<2x16x128xf32>
    %cst_6 = arith.constant 0.000000e+00 : f32
    %14 = vector.shape_cast %11 : vector<1x1x128xi1> to vector<1x1x128xi1>
    %15 = vector.broadcast %14 : vector<1x1x128xi1> to vector<2x16x128xi1>
    %16 = vector.broadcast %cst_6 : f32 to vector<2x16x128xf32>
    %17 = arith.select %15, %13, %16 : vector<2x16x128xi1>, vector<2x16x128xf32>
    %18 = arith.mulf %17, %17 : vector<2x16x128xf32>
    %cst_7 = arith.constant dense<0.000000e+00> : vector<16xf32>
    %19 = vector.multi_reduction <add>, %18, %cst_7 [0, 2] : vector<2x16x128xf32> to vector<16xf32>
    %20 = vector.shape_cast %19 : vector<16xf32> to vector<1x16x1xf32>
    %cst_8 = arith.constant 7.812500e-03 : f32
    %21 = vector.broadcast %cst_8 : f32 to vector<1x16x1xf32>
    %22 = arith.mulf %20, %21 : vector<1x16x1xf32>
    %cst_9 = arith.constant 9.99999974E-6 : f32
    %23 = vector.broadcast %cst_9 : f32 to vector<1x16x1xf32>
    %24 = arith.addf %22, %23 : vector<1x16x1xf32>
    %25 = math.rsqrt %24 : vector<1x16x1xf32>
    %c0_10 = arith.constant 0 : index
    %c0_11 = arith.constant 0 : index
    %26 = vector.load %arg3[%c0_10, %c0_11] : memref<16x1xf32, #tpu.memory_space<vmem>>, vector<16x1xf32>
    %27 = vector.shape_cast %26 : vector<16x1xf32> to vector<1x16x1xf32>
    %28 = arith.mulf %27, %25 : vector<1x16x1xf32>
    %c0_12 = arith.constant 0 : index
    %c0_13 = arith.constant 0 : index
    %29 = vector.load %arg4[%c0_12, %c0_13] : memref<16x1xf32, #tpu.memory_space<vmem>>, vector<16x1xf32>
    %30 = vector.shape_cast %29 : vector<16x1xf32> to vector<1x16x1xf32>
    %31 = arith.mulf %8, %28 : vector<1x16x1xf32>
    %32 = arith.subf %30, %31 : vector<1x16x1xf32>
    %33 = vector.broadcast %28 : vector<1x16x1xf32> to vector<2x16x128xf32>
    %34 = arith.mulf %4, %33 : vector<2x16x128xf32>
    %35 = vector.broadcast %32 : vector<1x16x1xf32> to vector<2x16x128xf32>
    %36 = arith.addf %34, %35 : vector<2x16x128xf32>
    %c0_14 = arith.constant 0 : index
    %c0_15 = arith.constant 0 : index
    %c0_16 = arith.constant 0 : index
    %37 = vector.load %arg5[%c0_14, %c0_15, %c0_16] : memref<2x16x128xf32, #tpu.memory_space<vmem>>, vector<2x16x128xf32>
    tpu.vector_store %arg5[%c0_14, %c0_15, %c0_16], %36 {strides = array<i32>} : memref<2x16x128xf32, #tpu.memory_space<vmem>>, vector<2x16x128xf32>,
    return
  }
  func.func @transform_0(%arg0: i32) -> (i32, i32, i32) {
    %c0_i32 = arith.constant 0 : i32
    %c0_i32_0 = arith.constant 0 : i32
    %c0_i32_1 = arith.constant 0 : i32
    %c0_i32_2 = arith.constant 0 : i32
    return %c0_i32, %c0_i32_0, %c0_i32_1 : i32, i32, i32
  }
  func.func @transform_1(%arg0: i32) -> (i32, i32) {
    %c0_i32 = arith.constant 0 : i32
    %c0_i32_0 = arith.constant 0 : i32
    %c0_i32_1 = arith.constant 0 : i32
    return %c0_i32, %c0_i32_0 : i32, i32
  }
  func.func @transform_2(%arg0: i32) -> (i32, i32) {
    %c0_i32 = arith.constant 0 : i32
    %c0_i32_0 = arith.constant 0 : i32
    %c0_i32_1 = arith.constant 0 : i32
    return %c0_i32, %c0_i32_0 : i32, i32
  }
  func.func @transform_3(%arg0: i32) -> (i32, i32) {
    %c0_i32 = arith.constant 0 : i32
    %c0_i32_0 = arith.constant 0 : i32
    %c0_i32_1 = arith.constant 0 : i32
    return %c0_i32, %c0_i32_0 : i32, i32
  }
  func.func @transform_4(%arg0: i32) -> (i32, i32, i32) {
    %c0_i32 = arith.constant 0 : i32
    %c0_i32_0 = arith.constant 0 : i32
    %c0_i32_1 = arith.constant 0 : i32
    %c0_i32_2 = arith.constant 0 : i32
    return %c0_i32, %c0_i32_0, %c0_i32_1 : i32, i32, i32
  }
}

</mosaic_0001>

<bundles_post_ra>
// kernel: tpu_custom_call.1
= control target key start
LH: loop header
LB: loop body
LE: loop exit
PB: predicated region body
PF: predicated region fallthrough
CT: control target
= control target key end

     0   :  { %vm29_vm0 = vcmask 1043456   ;;  %vm22_vm1 = vcmask 31744   ;;  %s412_s0 = inlined_call_operand.vmem [shape: f32[2,4,128], index: 0, kind: input, shape index: {}]   ;;  %s413_s1 = inlined_call_operand.vmem [shape: f32[16,4], index: 1, kind: input, shape index: {}]   ;;  %s414_s2 = inlined_call_operand.vmem [shape: f32[16,1], index: 2, kind: input, shape index: {}]   ;;  %s415_s3 = inlined_call_operand.vmem [shape: f32[16,1], index: 3, kind: input, shape index: {}]   ;;  %s416_s4 = inlined_call_operand.hbm [shape: f32[2,16,128], index: 4, kind: output, shape index: {}]  }
   0x1   :  { %v18_v0 = vld [vmem:[%s412_s0] sm:$0xf]  ;;  %v19_v1 = vld [vmem:[%s412_s0 + $0x4] sm:$0xf]  ;;  %v21_v3 = vld [vmem:[%s413_s1 + $0x8] sm:$0xff] }
   0x2   :  { %v20_v2 = vld [vmem:[%s413_s1] sm:$0xff]  ;;  %293 = vmatprep.subr.msk.mxu0 %vm29_vm0, %v18_v0  ;;  %298 = vmatprep.subr.msk.mxu1 %vm29_vm0, %v19_v1 }
   0x3   :  { %9 = vsyncpa [#allocation3], 0  ;;  %294 = vmatpush3.msk.msra.mxu0 %vm29_vm0, %v18_v0  ;;  %295 = vmatprep.mubr.msk.f32.mxu0 %vm22_vm1, %v20_v2  ;;  %v194_v10 = vlaneseq  ;;  %v337_v30 = vmov 0   ;;  %v223_v37 = vld [vmem:[%s414_s2] sm:$0xff]  ;;  %v224_v40 = vld [vmem:[%s414_s2 + $0x8] sm:$0xff]  ;;  %s338_s2 = smov [#allocation2]  }
   0x4   :  { %299 = vmatpush3.msk.msra.mxu1 %vm29_vm0, %v19_v1  ;;  %300 = vmatprep.mubr.msk.f32.mxu1 %vm22_vm1, %v20_v2  ;;  %v227_v44 = vld [vmem:[%s415_s3] sm:$0xff]  ;;  %v228_v47 = vld [vmem:[%s415_s3 + $0x8] sm:$0xff]  ;;  %s270_s29 = sshll.u32 %s338_s2, 4  ;;  %s271_s29 = int_to_ptr.vmem [resolvable:$true] %s270_s29 }
   0x5   :  { %296 = vmatmul.mubr.msk.f32.vlgmr.msra.gmra.mrb[0].mxu0 %vm22_vm1, %v21_v3  ;;  %301 = vmatmul.mubr.msk.f32.vlgmr.msra.gmra.mrb[0].mxu1 %vm22_vm1, %v21_v3  ;;  %v195_v11 = vand.u32 127, %v194_v10  ;;  %s313_s3 = scalar_lea.vmem %s271_s29, 512  ;;  %p318_p1 = scmp.lt.s32.totalorder %s271_s29, %s271_s29 }
   0x6   :  { %307 = vset.pattern.permute.xlu0 %v337_v30  ;;  %308 = vset.pattern.permute.xlu1 %v337_v30  ;;  %p314_p0 = scmp.ne.s32.totalorder %s271_s29, %s313_s3  ;;  %p319_p2 = scmp.lt.s32.totalorder %s313_s3, %s313_s3 }
   0x7   :  { %vm196_vm2 = vcmp.lt.s32.totalorder %v195_v11, 64 }
   0x8   :  { %p320_p3 = por %p319_p2, %p318_p1 }
   0xa   :  { %p321_p4 = pnand %p320_p3, %p314_p0 }
  0xd8   :  { %v378_v4 = vpop.f32.mrb[0].mxu0  ;;  %v380_v5 = vpop.f32.mrb[0].mxu1 }
  0xd9   :  { %v99_v6 = vpop.f32.mrb[1].mxu0  ;;  %v177_v7 = vpop.f32.mrb[1].mxu1  ;;  %v189_v8 = vadd.f32 %v380_v5, %v378_v4 }
  0xda   :  { %v186_v9 = vadd.f32 %v177_v7, %v99_v6 }
  0xdc   :  { %187 = vadd.xlane.f32.xlu0 %v186_v9 }
  0xe0   :  { %190 = vadd.xlane.f32.xlu0 %v189_v8 }
 0x169   :  { %v188_v12 = vpop.xlane.xlu0 %187 }
 0x16a   :  { %v192_v13 = vmul.f32 0.0078125, %v188_v12 }
 0x16c   :  { %v197_v14 = vsub.f32 %v99_v6, %v192_v13  ;;  %v199_v15 = vsub.f32 %v177_v7, %v192_v13 }
 0x16d   :  { %v191_v16 = vpop.xlane.xlu0 %190 }
 0x16e   :  { %v193_v17 = vmul.f32 0.0078125, %v191_v16  ;;  %v203_v18 = vsel %vm196_vm2, %v197_v14, 0.0  ;;  %v205_v19 = vsel %vm196_vm2, %v199_v15, 0.0 }
 0x16f   :  { %v207_v20 = vmul.f32 %v203_v18, %v203_v18  ;;  %v209_v21 = vmul.f32 %v205_v19, %v205_v19 }
 0x170   :  { %v198_v22 = vsub.f32 %v378_v4, %v193_v17  ;;  %v200_v23 = vsub.f32 %v380_v5, %v193_v17 }
 0x171   :  { %v211_v24 = vadd.f32 %v209_v21, %v207_v20 }
 0x172   :  { %v204_v25 = vsel %vm196_vm2, %v198_v22, 0.0  ;;  %v206_v26 = vsel %vm196_vm2, %v200_v23, 0.0 }
 0x173   :  { %212 = vadd.xlane.f32.xlu1 %v211_v24  ;;  %v208_v27 = vmul.f32 %v204_v25, %v204_v25  ;;  %v210_v28 = vmul.f32 %v206_v26, %v206_v26 }
 0x175   :  { %v214_v29 = vadd.f32 %v210_v28, %v208_v27 }
 0x177   :  { %215 = vadd.xlane.f32.xlu1 %v214_v29 }
 0x200   :  { %v213_v31 = vpop.xlane.xlu1 %212 }
 0x201   :  { %v217_v32 = vmul.f32 0.0078125, %v213_v31 }
 0x203   :  { %v219_v33 = vadd.f32 1e-05, %v217_v32 }
 0x204   :  { %v216_v34 = vpop.xlane.xlu1 %215 }
 0x205   :  { %309 = vrsqrt.f32 %v219_v33  ;;  %v218_v35 = vmul.f32 0.0078125, %v216_v34 }
 0x207   :  { %v220_v36 = vadd.f32 1e-05, %v218_v35 }
 0x209   :  { %311 = vrsqrt.f32 %v220_v36 }
 0x20f   :  { %v310_v38 = vpop.eup %309 }
 0x210   :  { %v225_v39 = vmul.f32 %v310_v38, %v223_v37 }
 0x212   :  { %235 = vperm.xlu0 %307, %v225_v39   ;;  %v229_v43 = vmul.f32 %v225_v39, %v192_v13 }
 0x213   :  { %v312_v41 = vpop.eup %311 }
 0x214   :  { %v226_v42 = vmul.f32 %v312_v41, %v224_v40  ;;  %v231_v45 = vsub.f32 %v227_v44, %v229_v43 }
 0x216   :  { %240 = vperm.xlu1 %308, %v226_v42   ;;  %v230_v46 = vmul.f32 %v226_v42, %v193_v17 }
 0x218   :  { %v232_v48 = vsub.f32 %v228_v47, %v230_v46 }
 0x21a   :  { %249 = vperm.xlu1 %308, %v231_v45  }
 0x21e   :  { %254 = vperm.xlu1 %308, %v232_v48  }
 0x291   :  { %v236_v49 = vpop.permute.xlu0 %235 }
 0x292   :  { %v243_v51 = vmul.f32 %v236_v49, %v99_v6  ;;  %v245_v52 = vmul.f32 %v236_v49, %v177_v7 }
 0x295   :  { %v241_v50 = vpop.permute.xlu1 %240 }
 0x296   :  { %v244_v56 = vmul.f32 %v378_v4, %v241_v50  ;;  %v246_v57 = vmul.f32 %v380_v5, %v241_v50 }
 0x299   :  { %v250_v53 = vpop.permute.xlu1 %249 }
 0x29a   :  { %v257_v54 = vadd.f32 %v250_v53, %v243_v51  ;;  %v259_v55 = vadd.f32 %v250_v53, %v245_v52 }
 0x29c   :  { %261 = vst [vmem:[#allocation2] sm:$0xff] %v257_v54  ;;  %263 = vst [vmem:[#allocation2 + $0x10] sm:$0xff] %v259_v55 }
 0x29d   :  { %v255_v58 = vpop.permute.xlu1 %254 }
 0x29e   :  { %v258_v59 = vadd.f32 %v255_v58, %v244_v56  ;;  %v260_v60 = vadd.f32 %v255_v58, %v246_v57 }
 0x2a0   :  { %262 = vst [vmem:[#allocation2 + $0x8] sm:$0xff] %v258_v59  ;;  %264 = vst [vmem:[#allocation2 + $0x18] sm:$0xff] %v260_v60 }
 0x2a1   :  { %324 = shalt.err (!%p321_p4)
}
 0x2a2   :  { %s325_s6 = scalar_lea.hbm %s416_s4, 512 }
 0x2a3   :  { %p326_p5 = scmp.ne.s32.totalorder %s416_s4, %s325_s6  ;;  %p329_p6 = scmp.lt.u32.totalorder %s325_s6, %s416_s4 }
 0x2a5   :  { %p331_p7 = pnand %p329_p6, %p326_p5 }
 0x2a7   :  { %334 = shalt.err (!%p331_p7)
}
 0x2a8   :  { %s339_s11 = smov 128   ;;  %s340_s12 = smov 8  }
 0x2a9   :  { %276 = dma.vmem_to_hbm [thread:$0]  %s271_s29, 512, %s416_s4, [#allocation3], %s339_s11, %s339_s11, %s340_s12  }
 0x2aa   :  { %335 = dma.done.wait [#allocation3], 512  }
 0x2ab   :  { %336 = vsyncadd [#allocation3], 4294966784 }
 0x2ac   :  { %280 = vsyncpa [#allocation3], 1 }

</bundles_post_ra>
